<compile_context>
chip_gen: v7x
topology: tpu7x:2x2x1
jax: 0.10.0
libtpu: 0.0.40
codegen_flags: <defaults>
</compile_context>

<pallas_src>
import functools

import jax
import jax.numpy as jnp
from jax import lax
from jax.experimental import pallas as pl
from jax.experimental.pallas import tpu as pltpu


def _round_up(n, m):
    return ((n + m - 1) // m) * m


def _cnn_kernel(x_ref, w_ref, b_ref, o_ref, *, K, L_out, chunk, n_chunks):
    # x_ref : (L_pad, TB, C_in)       compute dtype (bf16/f32), zero-padded along L & B
    # w_ref : (K*C_in, C_out_pad)     compute dtype (im2col-folded weight slab)
    # b_ref : (1, C_out_pad)          f32
    # o_ref : (TB, C_out_pad)         f32
    _, TB, C_in = x_ref.shape
    C_out_p = w_ref.shape[1]

    w = w_ref[...]                                            # small resident weight slab

    def chunk_max(start):
        # Slice only the rows this chunk needs (leading-dim slice: cheap, pipelineable).
        xc = x_ref[pl.ds(start, chunk + K - 1)]               # (chunk+K-1, TB, C_in)
        # In-kernel im2col: fold the K taps onto the lane axis (rides the XLU).
        lhs = jnp.concatenate([xc[k:k + chunk] for k in range(K)], axis=-1)
        lhs = lhs.reshape(chunk * TB, K * C_in)               # (chunk*TB, K*C_in)
        # One MXU GEMM, depth K*C_in, f32 accumulate.
        acc = jnp.dot(lhs, w, preferred_element_type=jnp.float32)   # (chunk*TB, C_out_p)
        # Max over the time positions of this chunk (raw conv values; bias/ReLU later).
        return jnp.max(acc.reshape(chunk, TB, C_out_p), axis=0)     # (TB, C_out_p)

    if n_chunks == 1:
        m = chunk_max(0)
    else:
        def body(i, m):
            # Clamp the last chunk instead of masking: overlapping positions are
            # harmless under max, and no padded (all-zero) time row is ever included.
            start = jnp.minimum(i * chunk, L_out - chunk)
            return jnp.maximum(m, chunk_max(start))

        m = lax.fori_loop(0, n_chunks, body,
                          jnp.full((TB, C_out_p), -jnp.inf, jnp.float32),
                          unroll=(n_chunks <= 4))

    # Tiny f32 epilogue: bias + ReLU after the max (valid: both are monotone per channel).
    o_ref[...] = jnp.maximum(m + b_ref[...], 0.0).astype(o_ref.dtype)


def cnn_forward(x, weight, bias, padding=1, compute_dtype=jnp.bfloat16,
                block_b=None, time_chunk=None):
    """x: (B, C_in, L); weight: (C_out, C_in, K); bias: (C_out,) -> (B, C_out)."""
    B, C_in, L = x.shape
    C_out, _, K = weight.shape
    L_pad = L + 2 * padding
    L_out = L_pad - K + 1
    assert L_out >= 1, "L + 2*padding must be >= kernel_size"

    # Lane-dense output channels (padded to a multiple of 128, sliced off below).
    C_out_p = _round_up(C_out, 128)

    # Batch tile: multiple of the sublane tile so the in-kernel reshapes are layout-free.
    sub = 16 if compute_dtype == jnp.bfloat16 else 8
    if block_b is None:
        block_b = min(64, _round_up(B, sub))     # cap at 64: v7x VMEM + earlier 2-program grid
    block_b = _round_up(block_b, sub)
    B_p = _round_up(B, block_b)

    # Time chunk: ~256-512 GEMM rows per MXU push, clamped to L_out.
    if time_chunk is None:
        time_chunk = max(8, 256 // block_b)
    chunk = min(time_chunk, L_out)
    n_chunks = pl.cdiv(L_out, chunk)

    # x: (B, C_in, L) -> (L_pad, B_p, C_in); zero-pad L (conv padding) and B (tile pad).
    xt = jnp.transpose(x, (2, 0, 1))                                    # (L, B, C_in)
    xt = jnp.pad(xt, ((padding, padding), (0, B_p - B), (0, 0))).astype(compute_dtype)

    # weight: (C_out, C_in, K) -> (K, C_in, C_out) -> single (K*C_in, C_out_p) slab,
    # k-major / c-minor rows to match the in-kernel im2col concat ordering.
    wt = jnp.transpose(weight, (2, 1, 0)).reshape(K * C_in, C_out)
    wt = jnp.pad(wt, ((0, 0), (0, C_out_p - C_out))).astype(compute_dtype)

    b2 = jnp.pad(bias.astype(jnp.float32), (0, C_out_p - C_out)).reshape(1, C_out_p)

    # Explicit VMEM budget: double-buffered x block + weight slab + bias + double-buffered
    # output block, with headroom.  Capped at 64 MiB (v7x physical VMEM per TC).
    db = jnp.dtype(compute_dtype).itemsize
    x_blk = L_pad * block_b * C_in * db
    w_blk = K * C_in * C_out_p * db
    b_blk = C_out_p * 4
    o_blk = block_b * C_out_p * 4
    budget = 2 * x_blk + 2 * w_blk + 2 * b_blk + 2 * o_blk
    vmem_limit = int(min(max(2 * budget + (4 << 20), 16 << 20), 64 << 20))

    kernel = functools.partial(_cnn_kernel, K=K, L_out=L_out, chunk=chunk, n_chunks=n_chunks)

    out = pl.pallas_call(
        kernel,
        out_shape=jax.ShapeDtypeStruct((B_p, C_out_p), jnp.float32),
        grid_spec=pltpu.PrefetchScalarGridSpec(
            num_scalar_prefetch=0,
            grid=(B_p // block_b,),
            in_specs=[
                pl.BlockSpec((L_pad, block_b, C_in), lambda i: (0, i, 0)),
                pl.BlockSpec((K * C_in, C_out_p), lambda i: (0, 0)),
                pl.BlockSpec((1, C_out_p), lambda i: (0, 0)),
            ],
            out_specs=pl.BlockSpec((block_b, C_out_p), lambda i: (i, 0)),
        ),
        compiler_params=pltpu.CompilerParams(
            dimension_semantics=("parallel",),
            vmem_limit_bytes=vmem_limit,
        ),
    )(xt, wt, b2)

    return out[:B, :C_out].astype(x.dtype)


def _reference(x, weight, bias, padding=1):
    # Pure-JAX f32 reference (lax conv) for a sanity check.
    h = jax.lax.conv_general_dilated(
        x, weight, window_strides=(1,), padding=[(padding, padding)],
        dimension_numbers=("NCH", "OIH", "NCH"),
    ) + bias[None, :, None]
    return jnp.max(jnp.maximum(h, 0.0), axis=2)


if __name__ == "__main__":
    # Small shapes consistent with the module: input_size=C_in, filter_size=C_out,
    # kernel_size=5, padding=1.
    B, C_in, L = 2, 8, 16
    C_out, K = 16, 5

    key = jax.random.PRNGKey(0)
    kx, kw, kb = jax.random.split(key, 3)

    x = jax.random.normal(kx, (B, C_in, L), dtype=jnp.float32)
    # Deterministic "Conv1d-like" init (uniform in +/- 1/sqrt(C_in*K)).
    bound = 1.0 / jnp.sqrt(jnp.float32(C_in * K))
    weight = jax.random.uniform(kw, (C_out, C_in, K), jnp.float32, -bound, bound)
    bias = jax.random.uniform(kb, (C_out,), jnp.float32, -bound, bound)

    ref = _reference(x, weight, bias)

    # f32 compute path: tight tolerance against the f32 reference.
    out_f32 = jax.block_until_ready(cnn_forward(x, weight, bias, compute_dtype=jnp.float32))
    assert out_f32.shape == (B, C_out), out_f32.shape
    assert jnp.allclose(out_f32, ref, atol=1e-4, rtol=1e-4), float(jnp.max(jnp.abs(out_f32 - ref)))

    # Default bf16 MXU path (f32 accumulate): bf16-appropriate tolerance.
    out_bf16 = jax.block_until_ready(cnn_forward(x, weight, bias))
    assert out_bf16.shape == (B, C_out), out_bf16.shape
    assert jnp.allclose(out_bf16, ref, atol=3e-2, rtol=3e-2), float(jnp.max(jnp.abs(out_bf16 - ref)))

    # Exercise the multi-chunk time-loop path too (forces chunk < L_out).
    out_chunked = jax.block_until_ready(
        cnn_forward(x, weight, bias, compute_dtype=jnp.float32, time_chunk=4))
    assert jnp.allclose(out_chunked, ref, atol=1e-4, rtol=1e-4), \
        float(jnp.max(jnp.abs(out_chunked - ref)))

    print("KERNEL_OK")
</pallas_src>

<mosaic_0001>
module attributes {stable_mosaic.version = 11 : i64} {
  func.func @_cnn_kernel(%arg0: i32, %arg1: memref<18x8x8xf32, #tpu.memory_space<vmem>>, %arg2: memref<40x128xf32, #tpu.memory_space<vmem>>, %arg3: memref<1x128xf32, #tpu.memory_space<vmem>>, %arg4: memref<8x128xf32, #tpu.memory_space<vmem>>) attributes {dimension_semantics = [#tpu.dimension_semantics<parallel>], iteration_bounds = array<i64: 1>, scalar_prefetch = 0 : i64, scratch_operands = 0 : i64, tpu.core_type = #tpu.core_type<tc>, window_params = [{transform_indices = @transform_0, window_bounds = array<i64: 18, 8, 8>}, {pipeline_mode = #tpu.pipeline_mode<synchronous>, transform_indices = @transform_1, window_bounds = array<i64: 40, 128>}, {pipeline_mode = #tpu.pipeline_mode<synchronous>, transform_indices = @transform_2, window_bounds = array<i64: 1, 128>}, {transform_indices = @transform_3, window_bounds = array<i64: 8, 128>}]} {
    %c0 = arith.constant 0 : index
    %c0_0 = arith.constant 0 : index
    %0 = vector.load %arg2[%c0, %c0_0] : memref<40x128xf32, #tpu.memory_space<vmem>>, vector<40x128xf32>
    %c0_1 = arith.constant 0 : index
    %c0_2 = arith.constant 0 : index
    %c0_3 = arith.constant 0 : index
    %1 = vector.load %arg1[%c0_1, %c0_2, %c0_3] : memref<18x8x8xf32, #tpu.memory_space<vmem>>, vector<18x8x8xf32>
    %2 = vector.extract_strided_slice %1 {offsets = [0, 0, 0], sizes = [14, 8, 8], strides = [1, 1, 1]} : vector<18x8x8xf32> to vector<14x8x8xf32>
    %3 = vector.extract_strided_slice %1 {offsets = [1, 0, 0], sizes = [14, 8, 8], strides = [1, 1, 1]} : vector<18x8x8xf32> to vector<14x8x8xf32>
    %4 = vector.extract_strided_slice %1 {offsets = [2, 0, 0], sizes = [14, 8, 8], strides = [1, 1, 1]} : vector<18x8x8xf32> to vector<14x8x8xf32>
    %5 = vector.extract_strided_slice %1 {offsets = [3, 0, 0], sizes = [14, 8, 8], strides = [1, 1, 1]} : vector<18x8x8xf32> to vector<14x8x8xf32>
    %6 = vector.extract_strided_slice %1 {offsets = [4, 0, 0], sizes = [14, 8, 8], strides = [1, 1, 1]} : vector<18x8x8xf32> to vector<14x8x8xf32>
    %7 = tpu.concatenate %2, %3, %4, %5, %6 in 2 : vector<14x8x8xf32>, vector<14x8x8xf32>, vector<14x8x8xf32>, vector<14x8x8xf32>, vector<14x8x8xf32> -> vector<14x8x40xf32>
    %8 = vector.shape_cast %7 : vector<14x8x40xf32> to vector<112x40xf32>
    %cst = arith.constant dense<0.000000e+00> : vector<112x128xf32>
    %9 = tpu.matmul %8, %0, %cst {dimension_numbers = #tpu.dot_dimension_numbers<[1], [0], [0], [1], [0, 0, 1, 1], [], []>} : vector<112x40xf32>, vector<40x128xf32>, vector<112x128xf32> -> vector<112x128xf32>
    %10 = vector.shape_cast %9 : vector<112x128xf32> to vector<14x8x128xf32>
    %cst_4 = arith.constant dense<0xFF800000> : vector<8x128xf32>
    %11 = vector.multi_reduction <maximumf>, %10, %cst_4 [0] : vector<14x8x128xf32> to vector<8x128xf32>
    %c0_5 = arith.constant 0 : index
    %c0_6 = arith.constant 0 : index
    %12 = vector.load %arg3[%c0_5, %c0_6] : memref<1x128xf32, #tpu.memory_space<vmem>>, vector<1x128xf32>
    %13 = vector.broadcast %12 : vector<1x128xf32> to vector<8x128xf32>
    %14 = arith.addf %11, %13 : vector<8x128xf32>
    %cst_7 = arith.constant 0.000000e+00 : f32
    %15 = vector.broadcast %cst_7 : f32 to vector<8x128xf32>
    %16 = arith.maximumf %14, %15 : vector<8x128xf32>
    %c0_8 = arith.constant 0 : index
    %c0_9 = arith.constant 0 : index
    %17 = vector.load %arg4[%c0_8, %c0_9] : memref<8x128xf32, #tpu.memory_space<vmem>>, vector<8x128xf32>
    tpu.vector_store %arg4[%c0_8, %c0_9], %16 {strides = array<i32>} : memref<8x128xf32, #tpu.memory_space<vmem>>, vector<8x128xf32>,
    return
  }
  func.func @transform_0(%arg0: i32) -> (i32, i32, i32) {
    %c0_i32 = arith.constant 0 : i32
    %c0_i32_0 = arith.constant 0 : i32
    %c0_i32_1 = arith.constant 0 : i32
    return %c0_i32, %arg0, %c0_i32_0 : i32, i32, i32
  }
  func.func @transform_1(%arg0: i32) -> (i32, i32) {
    %c0_i32 = arith.constant 0 : i32
    %c0_i32_0 = arith.constant 0 : i32
    %c0_i32_1 = arith.constant 0 : i32
    return %c0_i32, %c0_i32_0 : i32, i32
  }
  func.func @transform_2(%arg0: i32) -> (i32, i32) {
    %c0_i32 = arith.constant 0 : i32
    %c0_i32_0 = arith.constant 0 : i32
    %c0_i32_1 = arith.constant 0 : i32
    return %c0_i32, %c0_i32_0 : i32, i32
  }
  func.func @transform_3(%arg0: i32) -> (i32, i32) {
    %c0_i32 = arith.constant 0 : i32
    %c0_i32_0 = arith.constant 0 : i32
    return %arg0, %c0_i32 : i32, i32
  }
}

</mosaic_0001>

<bundles_post_ra>
// kernel: tpu_custom_call.1
= control target key start
LH: loop header
LB: loop body
LE: loop exit
PB: predicated region body
PF: predicated region fallthrough
CT: control target
= control target key end

     0   :  { %s606_s16 = smov 16   ;;  %s607_s17 = smov 8   ;;  %s926_s0 = inlined_call_operand.vmem [shape: f32[18,8,8], index: 0, kind: input, shape index: {}]   ;;  %s927_s1 = inlined_call_operand.vmem [shape: f32[40,128], index: 1, kind: input, shape index: {}]   ;;  %s928_s2 = inlined_call_operand.vmem [shape: f32[1,128], index: 2, kind: input, shape index: {}]   ;;  %s929_s3 = inlined_call_operand.hbm [shape: f32[8,128], index: 3, kind: output, shape index: {}]  }
   0x1   :  { %v634_v0 = vld [vmem:[%s926_s0 + $0x10] sm:$0xff]  ;;  %v639_v1 = vld [vmem:[%s926_s0 + $0x8] sm:$0xff]  ;;  %v648_v2 = vld [vmem:[%s926_s0 + $0x18] sm:$0xff] }
   0x2   :  { %95 = vrot.lane.b32.xlu1 %v634_v0, %s606_s16  ;;  %52 = vrot.lane.b32.xlu0 %v639_v1, %s607_s17  ;;  %v657_v3 = vld [vmem:[%s926_s0 + $0x20] sm:$0xff]  ;;  %v16_v5 = vld [vmem:[%s927_s1 + $0x8] sm:$0xff] }
   0x3   :  { %v15_v4 = vld [vmem:[%s927_s1] sm:$0xff]  ;;  %v17_v6 = vld [vmem:[%s927_s1 + $0x10] sm:$0xff]  ;;  %v18_v7 = vld [vmem:[%s927_s1 + $0x18] sm:$0xff] }
   0x4   :  { %v563_v8 = vpack.c.bf16 %v16_v5, %v15_v4  ;;  %v567_v9 = vpack.c.bf16 %v18_v7, %v17_v6 }
   0x6   :  { %97 = vrot.lane.b32.xlu1 %v648_v2, %s606_s16  ;;  %54 = vrot.lane.b32.xlu0 %v634_v0, %s607_s17 }
   0x7   :  { %8 = vsyncpa [#allocation3], 0  ;;  %s608_s30 = smov 24   ;;  %564 = vmatprep.subr.bf16.mxu0 %v563_v8  ;;  %571 = vmatprep.subr.bf16.mxu1 %v563_v8  ;;  %s609_s4 = smov 32   ;;  %v19_v10 = vld [vmem:[%s927_s1 + $0x20] sm:$0xff]  ;;  %v685_v11 = vld [vmem:[%s926_s0 + $0x28] sm:$0xff] }
   0x8   :  { %566 = vmatpush3.bf16.msra.mxu0 %v563_v8  ;;  %574 = vmatpush3.bf16.msra.mxu1 %v563_v8  ;;  %v694_v12 = vld [vmem:[%s926_s0 + $0x48] sm:$0xff]  ;;  %v707_v13 = vld [vmem:[%s926_s0 + $0x50] sm:$0xff]  ;;  %v725_v15 = vld [vmem:[%s926_s0 + $0x58] sm:$0xff]  ;;  %vm223_vm0 = vcmask 64512   ;;  %vm238_vm1 = vcmask 130048   ;;  %vm253_vm2 = vcmask 195584  }
   0x9   :  { %568 = vmatprep.subr.bf16.mxu0 %v567_v9  ;;  %572 = vmatprep.subr.bf16.mxu1 %v567_v9  ;;  %v716_v14 = vld [vmem:[%s926_s0 + $0x30] sm:$0xff]  ;;  %v734_v16 = vld [vmem:[%s926_s0 + $0x38] sm:$0xff]  ;;  %v747_v17 = vld [vmem:[%s926_s0 + $0x60] sm:$0xff]  ;;  %vm268_vm3 = vcmask 261120   ;;  %vm283_vm4 = vcmask 326656  }
   0xa   :  { %140 = vrot.lane.b32.xlu1 %v657_v3, %s608_s30  ;;  %138 = vrot.lane.b32.xlu0 %v648_v2, %s608_s30  ;;  %v760_v18 = vld [vmem:[%s926_s0 + $0x68] sm:$0xff]  ;;  %v773_v19 = vld [vmem:[%s926_s0 + $0x40] sm:$0xff] }
   0xb   :  { %v34_v20 = vld [vmem:[%s926_s0 + $0x70] sm:$0xff]  ;;  %v35_v21 = vld [vmem:[%s926_s0 + $0x78] sm:$0xff]  ;;  %v36_v22 = vld [vmem:[%s926_s0 + $0x80] sm:$0xff] }
   0xc   :  { %570 = vmatpush3.bf16.msra.mxu0 %v567_v9  ;;  %575 = vmatpush3.bf16.msra.mxu1 %v567_v9  ;;  %v37_v23 = vld [vmem:[%s926_s0 + $0x88] sm:$0xff]  ;;  %v20_v28 = vld [vmem:[%s926_s0] sm:$0xff] }
   0xd   :  { %540 = vmatprep.subr.mxu0 %v19_v10  ;;  %573 = vmatprep.subr.mxu1 %v19_v10 }
   0xe   :  { %56 = vrot.lane.b32.xlu1 %v648_v2, %s607_s17  ;;  %181 = vrot.lane.b32.xlu0 %v657_v3, %s609_s4 }
  0x10   :  { %541 = vmatpush3.msra.mxu0 %v19_v10  ;;  %576 = vmatpush3.msra.mxu1 %v19_v10 }
  0x12   :  { %58 = vrot.lane.b32.xlu1 %v657_v3, %s607_s17  ;;  %183 = vrot.lane.b32.xlu0 %v685_v11, %s609_s4 }
  0x16   :  { %68 = vrot.lane.b32.xlu1 %v694_v12, %s607_s17  ;;  %99 = vrot.lane.b32.xlu0 %v657_v3, %s606_s16 }
  0x1a   :  { %142 = vrot.lane.b32.xlu1 %v685_v11, %s608_s30  ;;  %101 = vrot.lane.b32.xlu0 %v685_v11, %s606_s16 }
  0x1e   :  { %111 = vrot.lane.b32.xlu1 %v707_v13, %s606_s16  ;;  %70 = vrot.lane.b32.xlu0 %v707_v13, %s607_s17 }
  0x22   :  { %185 = vrot.lane.b32.xlu1 %v716_v14, %s609_s4  ;;  %144 = vrot.lane.b32.xlu0 %v716_v14, %s608_s30 }
  0x26   :  { %113 = vrot.lane.b32.xlu1 %v725_v15, %s606_s16  ;;  %60 = vrot.lane.b32.xlu0 %v685_v11, %s607_s17 }
  0x2a   :  { %187 = vrot.lane.b32.xlu1 %v734_v16, %s609_s4  ;;  %154 = vrot.lane.b32.xlu0 %v725_v15, %s608_s30 }
  0x2e   :  { %103 = vrot.lane.b32.xlu1 %v716_v14, %s606_s16  ;;  %62 = vrot.lane.b32.xlu0 %v716_v14, %s607_s17 }
  0x32   :  { %197 = vrot.lane.b32.xlu1 %v747_v17, %s609_s4  ;;  %156 = vrot.lane.b32.xlu0 %v747_v17, %s608_s30 }
  0x36   :  { %105 = vrot.lane.b32.xlu1 %v734_v16, %s606_s16  ;;  %72 = vrot.lane.b32.xlu0 %v725_v15, %s607_s17 }
  0x3a   :  { %199 = vrot.lane.b32.xlu1 %v760_v18, %s609_s4  ;;  %146 = vrot.lane.b32.xlu0 %v734_v16, %s608_s30 }
  0x3e   :  { %115 = vrot.lane.b32.xlu1 %v747_v17, %s606_s16  ;;  %74 = vrot.lane.b32.xlu0 %v747_v17, %s607_s17 }
  0x42   :  { %189 = vrot.lane.b32.xlu1 %v773_v19, %s609_s4  ;;  %148 = vrot.lane.b32.xlu0 %v773_v19, %s608_s30 }
  0x46   :  { %117 = vrot.lane.b32.xlu1 %v760_v18, %s606_s16  ;;  %64 = vrot.lane.b32.xlu0 %v734_v16, %s607_s17 }
  0x4a   :  { %191 = vrot.lane.b32.xlu1 %v694_v12, %s609_s4  ;;  %158 = vrot.lane.b32.xlu0 %v760_v18, %s608_s30 }
  0x4e   :  { %107 = vrot.lane.b32.xlu1 %v773_v19, %s606_s16  ;;  %66 = vrot.lane.b32.xlu0 %v773_v19, %s607_s17 }
  0x52   :  { %201 = vrot.lane.b32.xlu1 %v34_v20, %s609_s4  ;;  %160 = vrot.lane.b32.xlu0 %v34_v20, %s608_s30 }
  0x56   :  { %109 = vrot.lane.b32.xlu1 %v694_v12, %s606_s16  ;;  %76 = vrot.lane.b32.xlu0 %v760_v18, %s607_s17 }
  0x5a   :  { %203 = vrot.lane.b32.xlu1 %v35_v21, %s609_s4  ;;  %150 = vrot.lane.b32.xlu0 %v694_v12, %s608_s30 }
  0x5e   :  { %119 = vrot.lane.b32.xlu1 %v34_v20, %s606_s16  ;;  %78 = vrot.lane.b32.xlu0 %v34_v20, %s607_s17 }
  0x62   :  { %193 = vrot.lane.b32.xlu1 %v707_v13, %s609_s4  ;;  %152 = vrot.lane.b32.xlu0 %v707_v13, %s608_s30 }
  0x66   :  { %162 = vrot.lane.b32.xlu1 %v35_v21, %s608_s30  ;;  %121 = vrot.lane.b32.xlu0 %v35_v21, %s606_s16 }
  0x6a   :  { %164 = vrot.lane.b32.xlu1 %v36_v22, %s608_s30  ;;  %195 = vrot.lane.b32.xlu0 %v725_v15, %s609_s4 }
  0x6e   :  { %207 = vrot.lane.b32.xlu1 %v37_v23, %s609_s4  ;;  %205 = vrot.lane.b32.xlu0 %v36_v22, %s609_s4  ;;  %s610_s4 = smov [#allocation2]  }
  0x6f   :  { %s490_s9 = sshll.u32 %s610_s4, 4  ;;  %s491_s9 = int_to_ptr.vmem [resolvable:$true] %s490_s9 }
  0x70   :  { %s582_s10 = scalar_lea.vmem %s491_s9, 128  ;;  %p587_p1 = scmp.lt.s32.totalorder %s491_s9, %s491_s9 }
  0x71   :  { %p583_p0 = scmp.ne.s32.totalorder %s491_s9, %s582_s10  ;;  %p588_p2 = scmp.lt.s32.totalorder %s582_s10, %s582_s10 }
  0x73   :  { %p589_p3 = por %p588_p2, %p587_p1 }
  0x74   :  { %v96_v24 = vpop.permute.xlu1 %95  ;;  %v53_v25 = vpop.permute.xlu0 %52 }
  0x75   :  { %v224_v29 = vsel %vm223_vm0, %v20_v28, %v53_v25  ;;  %p590_p4 = pnand %p589_p3, %p583_p0 }
  0x76   :  { %v239_v32 = vsel %vm238_vm1, %v224_v29, %v96_v24 }
  0x78   :  { %v98_v26 = vpop.permute.xlu1 %97  ;;  %v55_v27 = vpop.permute.xlu0 %54 }
  0x79   :  { %v225_v33 = vsel %vm223_vm0, %v639_v1, %v55_v27 }
  0x7a   :  { %v240_v38 = vsel %vm238_vm1, %v225_v33, %v98_v26 }
  0x7c   :  { %v141_v30 = vpop.permute.xlu1 %140  ;;  %v139_v31 = vpop.permute.xlu0 %138 }
  0x7d   :  { %v254_v34 = vsel %vm253_vm2, %v239_v32, %v139_v31  ;;  %v255_v39 = vsel %vm253_vm2, %v240_v38, %v141_v30 }
  0x80   :  { %v57_v35 = vpop.permute.xlu1 %56  ;;  %v182_v36 = vpop.permute.xlu0 %181 }
  0x81   :  { %v269_v37 = vsel %vm268_vm3, %v254_v34, %v182_v36  ;;  %v226_v49 = vsel %vm223_vm0, %v634_v0, %v57_v35 }
  0x82   :  { %542 = vmatprep.mubr.msk.f32.mxu0 %vm283_vm4, %v269_v37 }
  0x84   :  { %v59_v40 = vpop.permute.xlu1 %58  ;;  %v184_v41 = vpop.permute.xlu0 %183 }
  0x85   :  { %v270_v42 = vsel %vm268_vm3, %v255_v39, %v184_v41  ;;  %v227_v57 = vsel %vm223_vm0, %v648_v2, %v59_v40 }
  0x86   :  { %543 = vmatmul.mubr.msk.f32.vlgmr.msra.gmra.mrb[0].mxu0 %vm283_vm4, %v270_v42 }
  0x88   :  { %v69_v43 = vpop.permute.xlu1 %68  ;;  %v100_v44 = vpop.permute.xlu0 %99 }
  0x89   :  { %v241_v50 = vsel %vm238_vm1, %v226_v49, %v100_v44  ;;  %v232_v1 = vsel %vm223_vm0, %v773_v19, %v69_v43 }
  0x8c   :  { %v143_v45 = vpop.permute.xlu1 %142  ;;  %v102_v46 = vpop.permute.xlu0 %101 }
  0x8d   :  { %v256_v51 = vsel %vm253_vm2, %v241_v50, %v143_v45  ;;  %v242_v58 = vsel %vm238_vm1, %v227_v57, %v102_v46 }
  0x90   :  { %v112_v47 = vpop.permute.xlu1 %111  ;;  %v71_v48 = vpop.permute.xlu0 %70 }
  0x91   :  { %v247_v4 = vsel %vm238_vm1, %v232_v1, %v112_v47  ;;  %v233_v10 = vsel %vm223_vm0, %v694_v12, %v71_v48 }
  0x94   :  { %v186_v52 = vpop.permute.xlu1 %185  ;;  %v145_v53 = vpop.permute.xlu0 %144 }
  0x95   :  { %v271_v54 = vsel %vm268_vm3, %v256_v51, %v186_v52  ;;  %v257_v59 = vsel %vm253_vm2, %v242_v58, %v145_v53 }
  0x96   :  { %545 = vmatprep.mubr.msk.f32.mxu0 %vm283_vm4, %v271_v54 }
  0x98   :  { %v114_v55 = vpop.permute.xlu1 %113  ;;  %v61_v56 = vpop.permute.xlu0 %60 }
  0x99   :  { %v248_v20 = vsel %vm238_vm1, %v233_v10, %v114_v55  ;;  %v228_v26 = vsel %vm223_vm0, %v657_v3, %v61_v56 }
  0x9c   :  { %v188_v60 = vpop.permute.xlu1 %187  ;;  %v155_v61 = vpop.permute.xlu0 %154 }
  0x9d   :  { %v272_v62 = vsel %vm268_vm3, %v257_v59, %v188_v60  ;;  %v262_v5 = vsel %vm253_vm2, %v247_v4, %v155_v61 }
  0x9e   :  { %546 = vmatmul.mubr.msk.f32.gmra.mrb[2].mxu0 %vm283_vm4, %v272_v62 }
  0xa0   :  { %v104_v63 = vpop.permute.xlu1 %103  ;;  %v63_v0 = vpop.permute.xlu0 %62 }
  0xa1   :  { %v243_v27 = vsel %vm238_vm1, %v228_v26, %v104_v63  ;;  %v229_v33 = vsel %vm223_vm0, %v685_v11, %v63_v0 }
  0xa4   :  { %v198_v2 = vpop.permute.xlu1 %197  ;;  %v157_v6 = vpop.permute.xlu0 %156 }
  0xa5   :  { %v277_v7 = vsel %vm268_vm3, %v262_v5, %v198_v2  ;;  %v263_v21 = vsel %vm253_vm2, %v248_v20, %v157_v6 }
  0xa6   :  { %554 = vmatprep.mubr.msk.f32.mxu1 %vm283_vm4, %v277_v7 }
  0xa8   :  { %v106_v8 = vpop.permute.xlu1 %105  ;;  %v73_v9 = vpop.permute.xlu0 %72 }
  0xa9   :  { %v244_v34 = vsel %vm238_vm1, %v229_v33, %v106_v8  ;;  %v234_v40 = vsel %vm223_vm0, %v707_v13, %v73_v9 }
  0xac   :  { %v200_v19 = vpop.permute.xlu1 %199  ;;  %v147_v22 = vpop.permute.xlu0 %146 }
  0xad   :  { %v278_v23 = vsel %vm268_vm3, %v263_v21, %v200_v19  ;;  %v258_v28 = vsel %vm253_vm2, %v243_v27, %v147_v22 }
  0xae   :  { %555 = vmatmul.mubr.msk.f32.vlgmr.msra.gmra.mrb[0].mxu1 %vm283_vm4, %v278_v23 }
  0xb0   :  { %v116_v24 = vpop.permute.xlu1 %115  ;;  %v75_v25 = vpop.permute.xlu0 %74 }
  0xb1   :  { %v249_v41 = vsel %vm238_vm1, %v234_v40, %v116_v24  ;;  %v235_v47 = vsel %vm223_vm0, %v725_v15, %v75_v25 }
  0xb4   :  { %v190_v12 = vpop.permute.xlu1 %189  ;;  %v149_v29 = vpop.permute.xlu0 %148 }
  0xb5   :  { %v273_v30 = vsel %vm268_vm3, %v258_v28, %v190_v12  ;;  %v259_v35 = vsel %vm253_vm2, %v244_v34, %v149_v29 }
  0xb6   :  { %548 = vmatprep.mubr.msk.f32.mxu0 %vm283_vm4, %v273_v30 }
  0xb8   :  { %v118_v31 = vpop.permute.xlu1 %117  ;;  %v65_v32 = vpop.permute.xlu0 %64 }
  0xb9   :  { %v250_v48 = vsel %vm238_vm1, %v235_v47, %v118_v31  ;;  %v230_v54 = vsel %vm223_vm0, %v716_v14, %v65_v32 }
  0xbc   :  { %v192_v3 = vpop.permute.xlu1 %191  ;;  %v159_v36 = vpop.permute.xlu0 %158 }
  0xbd   :  { %v274_v37 = vsel %vm268_vm3, %v259_v35, %v192_v3  ;;  %v264_v42 = vsel %vm253_vm2, %v249_v41, %v159_v36 }
  0xbe   :  { %549 = vmatmul.mubr.msk.f32.gmra.mrb[4].mxu0 %vm283_vm4, %v274_v37 }
  0xc0   :  { %v108_v38 = vpop.permute.xlu1 %107  ;;  %v67_v39 = vpop.permute.xlu0 %66 }
  0xc1   :  { %v245_v55 = vsel %vm238_vm1, %v230_v54, %v108_v38  ;;  %v231_v61 = vsel %vm223_vm0, %v734_v16, %v67_v39 }
  0xc4   :  { %v202_v11 = vpop.permute.xlu1 %201  ;;  %v161_v43 = vpop.permute.xlu0 %160 }
  0xc5   :  { %v279_v44 = vsel %vm268_vm3, %v264_v42, %v202_v11  ;;  %v265_v49 = vsel %vm253_vm2, %v250_v48, %v161_v43  ;;  %v512_v42 = vld [vmem:[%s928_s2] ss:$0 sm:$0xff] }
  0xc6   :  { %557 = vmatprep.mubr.msk.f32.mxu1 %vm283_vm4, %v279_v44 }
  0xc8   :  { %v110_v45 = vpop.permute.xlu1 %109  ;;  %v77_v46 = vpop.permute.xlu0 %76 }
  0xc9   :  { %v246_v62 = vsel %vm238_vm1, %v231_v61, %v110_v45  ;;  %v236_v4 = vsel %vm223_vm0, %v747_v17, %v77_v46 }
  0xcc   :  { %v204_v13 = vpop.permute.xlu1 %203  ;;  %v151_v50 = vpop.permute.xlu0 %150 }
  0xcd   :  { %v280_v51 = vsel %vm268_vm3, %v265_v49, %v204_v13  ;;  %v260_v56 = vsel %vm253_vm2, %v245_v55, %v151_v50 }
  0xce   :  { %558 = vmatmul.mubr.msk.f32.gmra.mrb[2].mxu1 %vm283_vm4, %v280_v51 }
  0xd0   :  { %v120_v52 = vpop.permute.xlu1 %119  ;;  %v79_v53 = vpop.permute.xlu0 %78 }
  0xd1   :  { %v237_v5 = vsel %vm223_vm0, %v760_v18, %v79_v53  ;;  %v251_v2 = vsel %vm238_vm1, %v236_v4, %v120_v52 }
  0xd4   :  { %v194_v15 = vpop.permute.xlu1 %193  ;;  %v153_v57 = vpop.permute.xlu0 %152 }
  0xd5   :  { %v275_v58 = vsel %vm268_vm3, %v260_v56, %v194_v15  ;;  %v261_v63 = vsel %vm253_vm2, %v246_v62, %v153_v57 }
  0xd6   :  { %551 = vmatprep.mubr.msk.f32.mxu0 %vm283_vm4, %v275_v58 }
  0xd8   :  { %v163_v59 = vpop.permute.xlu1 %162  ;;  %v122_v60 = vpop.permute.xlu0 %121 }
  0xd9   :  { %v252_v16 = vsel %vm238_vm1, %v237_v5, %v122_v60  ;;  %v266_v6 = vsel %vm253_vm2, %v251_v2, %v163_v59 }
  0xdc   :  { %v165_v14 = vpop.permute.xlu1 %164  ;;  %v196_v0 = vpop.permute.xlu0 %195 }
  0xdd   :  { %v276_v1 = vsel %vm268_vm3, %v261_v63, %v196_v0  ;;  %v267_v7 = vsel %vm253_vm2, %v252_v16, %v165_v14 }
  0xde   :  { %552 = vmatmul.mubr.msk.f32.gmra.mrb[6].mxu0 %vm283_vm4, %v276_v1 }
  0xe0   :  { %v208_v8 = vpop.permute.xlu1 %207  ;;  %v206_v9 = vpop.permute.xlu0 %205 }
  0xe1   :  { %v282_v10 = vsel %vm268_vm3, %v267_v7, %v208_v8  ;;  %v281_v20 = vsel %vm268_vm3, %v266_v6, %v206_v9 }
  0xe2   :  { %560 = vmatprep.mubr.msk.f32.mxu1 %vm283_vm4, %v281_v20 }
  0xe3   :  { %561 = vmatmul.mubr.msk.f32.gmra.mrb[4].mxu1 %vm283_vm4, %v282_v10 }
 0x159   :  { %v544_v17 = vpop.f32.mrb[0].mxu0 }
 0x15a   :  { %v392_v18 = vpop.f32.mrb[1].mxu0 }
 0x171   :  { %v547_v21 = vpop.f32.mrb[2].mxu0 }
 0x172   :  { %v402_v19 = vpop.f32.mrb[3].mxu0 }
 0x181   :  { %v556_v22 = vpop.f32.mrb[0].mxu1 }
 0x182   :  { %v432_v23 = vpop.f32.mrb[1].mxu1 }
 0x191   :  { %v550_v24 = vpop.f32.mrb[4].mxu0 }
 0x192   :  { %v462_v25 = vmax.f32 %v544_v17, %v550_v24  ;;  %v412_v26 = vpop.f32.mrb[5].mxu0 }
 0x193   :  { %v461_v27 = vmax.f32 %v392_v18, %v412_v26 }
 0x194   :  { %v466_v28 = vmax.f32 %v462_v25, %v556_v22 }
 0x195   :  { %v465_v12 = vmax.f32 %v461_v27, %v432_v23 }
 0x1a1   :  { %v559_v29 = vpop.f32.mrb[2].mxu1 }
 0x1a2   :  { %v442_v30 = vpop.f32.mrb[3].mxu1 }
 0x1b1   :  { %v553_v31 = vpop.f32.mrb[6].mxu0 }
 0x1b2   :  { %v464_v32 = vmax.f32 %v547_v21, %v553_v31  ;;  %v422_v33 = vpop.f32.mrb[7].mxu0 }
 0x1b3   :  { %v463_v34 = vmax.f32 %v402_v19, %v422_v33 }
 0x1b4   :  { %v468_v35 = vmax.f32 %v464_v32, %v559_v29 }
 0x1b5   :  { %v467_v3 = vmax.f32 %v463_v34, %v442_v30 }
 0x1b6   :  { %v562_v36 = vpop.f32.mrb[4].mxu1 }
 0x1b7   :  { %v472_v37 = vmax.f32 %v467_v3, %v468_v35  ;;  %v470_v38 = vmax.f32 %v466_v28, %v562_v36  ;;  %v452_v39 = vpop.f32.mrb[5].mxu1 }
 0x1b8   :  { %v469_v40 = vmax.f32 %v465_v12, %v452_v39 }
 0x1ba   :  { %v471_v41 = vmax.f32 %v469_v40, %v470_v38 }
 0x1bc   :  { %v473_v11 = vmax.f32 %v471_v41, %v472_v37 }
 0x1be   :  { %v481_v43 = vadd.f32 %v512_v42, %v473_v11 }
 0x1c0   :  { %v482_v44 = vmax.f32 %v481_v43, 0.0 }
 0x1c2   :  { %483 = vst [vmem:[#allocation2] sm:$0xff] %v482_v44 }
 0x1c3   :  { %593 = shalt.err (!%p590_p4)
}
 0x1c4   :  { %s594_s12 = scalar_lea.hbm %s929_s3, 128 }
 0x1c5   :  { %p595_p5 = scmp.ne.s32.totalorder %s929_s3, %s594_s12  ;;  %p598_p6 = scmp.lt.u32.totalorder %s594_s12, %s929_s3 }
 0x1c7   :  { %p600_p7 = pnand %p598_p6, %p595_p5 }
 0x1c9   :  { %603 = shalt.err (!%p600_p7)
}
 0x1ca   :  { %493 = dma.vmem_to_hbm [thread:$0]  %s491_s9, 128, %s929_s3, [#allocation3]  }
 0x1cb   :  { %604 = dma.done.wait [#allocation3], 128  }
 0x1cc   :  { %605 = vsyncadd [#allocation3], 4294967168 }
 0x1cd   :  { %497 = vsyncpa [#allocation3], 1 }

</bundles_post_ra>
